<compile_context>
chip_gen: v5e
topology: v5e:2x2
jax: 0.10.0
libtpu: 0.0.40
codegen_flags: <defaults>
</compile_context>

<pallas_src>
import functools
import math

import jax
import jax.numpy as jnp
from jax.experimental import pallas as pl
from jax.experimental.pallas import tpu as pltpu


_SQRT_2_OVER_PI = math.sqrt(2.0 / math.pi)
_INV_SQRT2 = 1.0 / math.sqrt(2.0)


def _gelu_mul_f32(gate, up, approximate: str):
    """gelu(gate) * up, computed in float32 with folded constants."""
    if approximate == "tanh":
        # tanh runs on the EUP slot (essentially free); VPU only does a few muls.
        inner = _SQRT_2_OVER_PI * (gate + 0.044715 * (gate * gate * gate))
        return (0.5 * gate * up) * (1.0 + jnp.tanh(inner))
    # Exact erf-based GELU ("none").  lax.erf lowers to a VPU polynomial; the
    # surrounding ops are kept to: 1 mul (arg), 1 add, 3 muls.
    return (0.5 * gate * up) * (1.0 + jax.lax.erf(gate * _INV_SQRT2))


def _gelu_mul_split_kernel(gate_ref, up_ref, o_ref, *, approximate: str):
    # gate_ref / up_ref / o_ref: lane-aligned (tm, tn) tiles in VMEM.
    gate = gate_ref[...].astype(jnp.float32)
    up = up_ref[...].astype(jnp.float32)
    o_ref[...] = _gelu_mul_f32(gate, up, approximate).astype(o_ref.dtype)


def _gelu_mul_fused_kernel(x_ref, o_ref, *, d: int, approximate: str):
    # x_ref: (tm, 2*d).  When d % 128 == 0 both slices are lane-aligned (no
    # XLU re-layout) and the output block is the full lane-dense width d.
    # TODO(synk): for d % 128 != 0 the up-half slice starts mid-lane and the
    # output uses masked stores; pad odd hidden sizes in the wrapper if such
    # shapes ever matter for performance.
    gate = x_ref[:, :d].astype(jnp.float32)
    up = x_ref[:, d:].astype(jnp.float32)
    o_ref[...] = _gelu_mul_f32(gate, up, approximate).astype(o_ref.dtype)


def _vmem_limit_bytes() -> int:
    """Generation-aware VMEM budget with >=25% headroom."""
    try:
        cap = int(pltpu.get_tpu_info().vmem_capacity_bytes)
    except Exception:
        cap = 128 * 1024 * 1024
    # v7x (64 MiB/TC) -> 48 MiB; v5e/v6e (128 MiB) -> 96 MiB.
    return min(cap * 3 // 4, 96 * 1024 * 1024)


def _block_byte_target(vmem_limit: int, itemsize: int) -> int:
    """Per-input-block byte target.

    Budget = 2x double-buffered (gate + up + out) native-dtype blocks
             + ~2 full-block float32 upcast temporaries.
    """
    per_block_factor = 6 + 2 * max(1, 4 // itemsize)
    tgt = int(0.85 * vmem_limit) // per_block_factor
    return max(1 << 20, min(tgt, 6 << 20))


def _pick_col_tile(d: int, max_tn: int = 4096) -> int:
    """Largest multiple of 128 that divides d, capped at max_tn (0 if none)."""
    cand = min(d, max_tn)
    cand -= cand % 128
    while cand >= 128:
        if d % cand == 0:
            return cand
        cand -= 128
    return 0


def _pick_row_tile(n: int, width: int, itemsize: int, target_bytes: int,
                   max_tm: int = 4096) -> int:
    """Row tile: multiple of the dtype sublane packing, ~target_bytes/block."""
    base = max(8, 32 // itemsize)             # 8 f32, 16 bf16, 32 int8/fp8
    tm = (target_bytes // max(1, width * itemsize)) // base * base
    tm = max(base, min(tm, max_tm))
    # Cap so small-N shapes split into >=2 (ideally >=4) row blocks so the
    # "parallel" row axis can feed both TensorCores on dual-TC chips (v7x).
    # For large N the byte-target tile is smaller than this cap anyway.
    if n >= 4 * base:
        blocks = 4
    elif n >= 2 * base:
        blocks = 2
    else:
        blocks = 1
    cap = pl.cdiv(pl.cdiv(n, blocks), base) * base
    return max(base, min(tm, cap))


def gelu_and_mul(x: jax.Array, approximate: str = "none") -> jax.Array:
    """Pallas TPU implementation of GeluAndMul.forward.

    x: [..., 2*d]  ->  returns [..., d] with the same dtype as x.
    """
    assert x.shape[-1] % 2 == 0, "last dim must be even (2*d)"
    two_d = x.shape[-1]
    d = two_d // 2
    lead = x.shape[:-1]
    n = 1
    for s in lead:
        n *= s

    x2 = x.reshape(n, two_d)
    itemsize = jnp.dtype(x.dtype).itemsize
    vmem_limit = _vmem_limit_bytes()
    target_bytes = _block_byte_target(vmem_limit, itemsize)

    tn = _pick_col_tile(d)
    # Use the split path only when the column tile is reasonably wide; a
    # degenerate narrow tile (e.g. d = 128 * large_prime -> tn = 128) would
    # mean tiny strided DMA segments, so those go to the contiguous fused path.
    use_split = tn >= min(d, 512)

    if use_split:
        # Fast path: lane-aligned gate/up halves as two inputs on the same array.
        nj = d // tn
        tm = _pick_row_tile(n, tn, itemsize, target_bytes)
        grid = (pl.cdiv(n, tm), nj)
        kernel = functools.partial(_gelu_mul_split_kernel, approximate=approximate)
        out2 = pl.pallas_call(
            kernel,
            out_shape=jax.ShapeDtypeStruct((n, d), x.dtype),
            grid_spec=pltpu.PrefetchScalarGridSpec(
                num_scalar_prefetch=0,
                grid=grid,
                in_specs=[
                    pl.BlockSpec((tm, tn), lambda i, j: (i, j)),               # gate
                    pl.BlockSpec((tm, tn), lambda i, j, _nj=nj: (i, j + _nj)),  # up
                ],
                out_specs=pl.BlockSpec((tm, tn), lambda i, j: (i, j)),
            ),
            compiler_params=pltpu.CompilerParams(
                dimension_semantics=("parallel", "parallel"),
                vmem_limit_bytes=vmem_limit,
            ),
        )(x2, x2)
    else:
        # Fused path: contiguous full-width (tm, 2*d) block, split in-kernel.
        # Output block (tm, d) is legal even for d % 128 != 0 only because d
        # equals the full output width -- keep that invariant if refactoring.
        tm = _pick_row_tile(n, two_d, itemsize, target_bytes)
        grid = (pl.cdiv(n, tm),)
        kernel = functools.partial(
            _gelu_mul_fused_kernel, d=d, approximate=approximate
        )
        out2 = pl.pallas_call(
            kernel,
            out_shape=jax.ShapeDtypeStruct((n, d), x.dtype),
            grid_spec=pltpu.PrefetchScalarGridSpec(
                num_scalar_prefetch=0,
                grid=grid,
                in_specs=[pl.BlockSpec((tm, two_d), lambda i: (i, 0))],
                out_specs=pl.BlockSpec((tm, d), lambda i: (i, 0)),
            ),
            compiler_params=pltpu.CompilerParams(
                dimension_semantics=("parallel",),
                vmem_limit_bytes=vmem_limit,
            ),
        )(x2)

    return out2.reshape(*lead, d)


def gelu_and_mul_ref(x: jax.Array, approximate: str = "none") -> jax.Array:
    """Pure-JAX reference mirroring naive_forward."""
    d = x.shape[-1] // 2
    xf = x.astype(jnp.float32)
    gate, up = xf[..., :d], xf[..., d:]
    if approximate == "tanh":
        g = 0.5 * gate * (1.0 + jnp.tanh(
            _SQRT_2_OVER_PI * (gate + 0.044715 * gate ** 3)))
    else:
        g = 0.5 * gate * (1.0 + jax.lax.erf(gate * _INV_SQRT2))
    return (g * up).astype(x.dtype)


def _check(x, approximate, tol):
    out = gelu_and_mul(x, approximate=approximate)
    jax.block_until_ready(out)
    ref = gelu_and_mul_ref(x, approximate=approximate)
    assert out.shape == x.shape[:-1] + (x.shape[-1] // 2,), out.shape
    assert out.dtype == x.dtype, out.dtype
    diff = float(
        jnp.max(jnp.abs(out.astype(jnp.float32) - ref.astype(jnp.float32)))
    )
    if diff > tol:
        print(f"mismatch (approximate={approximate}, shape={x.shape}, "
              f"dtype={x.dtype}): max diff {diff}")
        return False
    return True


if __name__ == "__main__":
    key = jax.random.PRNGKey(0)
    k1, k2, k3 = jax.random.split(key, 3)
    ok = True

    # Fast split path: lane-aligned d = 128, bf16, ragged row counts (no pad).
    x_a = jax.random.normal(k1, (2, 8, 256), dtype=jnp.float32).astype(jnp.bfloat16)
    x_b = jax.random.normal(k2, (3, 5, 256), dtype=jnp.float32).astype(jnp.bfloat16)
    # Fused fallback path: d = 96 (not a multiple of 128), f32, ragged rows.
    x_c = jax.random.normal(k3, (3, 5, 192), dtype=jnp.float32)

    for approx in ("none", "tanh"):
        ok &= _check(x_a, approx, 2e-2)
        ok &= _check(x_b, approx, 2e-2)
        ok &= _check(x_c, approx, 5e-5)

    if ok:
        print("KERNEL_OK")
</pallas_src>

<mosaic_0001>
module attributes {stable_mosaic.version = 11 : i64} {
  func.func @_gelu_mul_split_kernel(%arg0: i32, %arg1: i32, %arg2: memref<16x128xbf16, #tpu.memory_space<vmem>>, %arg3: memref<16x128xbf16, #tpu.memory_space<vmem>>, %arg4: memref<16x128xbf16, #tpu.memory_space<vmem>>) attributes {dimension_semantics = [#tpu.dimension_semantics<parallel>, #tpu.dimension_semantics<parallel>], iteration_bounds = array<i64: 1, 1>, scalar_prefetch = 0 : i64, scratch_operands = 0 : i64, tpu.core_type = #tpu.core_type<tc>, window_params = [{transform_indices = @transform_0, window_bounds = array<i64: 16, 128>}, {transform_indices = @transform_1, window_bounds = array<i64: 16, 128>}, {transform_indices = @transform_2, window_bounds = array<i64: 16, 128>}]} {
    %c0 = arith.constant 0 : index
    %c0_0 = arith.constant 0 : index
    %0 = vector.load %arg2[%c0, %c0_0] : memref<16x128xbf16, #tpu.memory_space<vmem>>, vector<16x128xbf16>
    %1 = arith.extf %0 : vector<16x128xbf16> to vector<16x128xf32>
    %c0_1 = arith.constant 0 : index
    %c0_2 = arith.constant 0 : index
    %2 = vector.load %arg3[%c0_1, %c0_2] : memref<16x128xbf16, #tpu.memory_space<vmem>>, vector<16x128xbf16>
    %3 = arith.extf %2 : vector<16x128xbf16> to vector<16x128xf32>
    %cst = arith.constant 5.000000e-01 : f32
    %4 = vector.broadcast %cst : f32 to vector<16x128xf32>
    %5 = arith.mulf %4, %1 : vector<16x128xf32>
    %6 = arith.mulf %5, %3 : vector<16x128xf32>
    %cst_3 = arith.constant 0.707106769 : f32
    %7 = vector.broadcast %cst_3 : f32 to vector<16x128xf32>
    %8 = arith.mulf %1, %7 : vector<16x128xf32>
    %9 = math.erf %8 : vector<16x128xf32>
    %cst_4 = arith.constant 1.000000e+00 : f32
    %10 = vector.broadcast %cst_4 : f32 to vector<16x128xf32>
    %11 = arith.addf %10, %9 : vector<16x128xf32>
    %12 = arith.mulf %6, %11 : vector<16x128xf32>
    %13 = arith.truncf %12 : vector<16x128xf32> to vector<16x128xbf16>
    %c0_5 = arith.constant 0 : index
    %c0_6 = arith.constant 0 : index
    %14 = vector.load %arg4[%c0_5, %c0_6] : memref<16x128xbf16, #tpu.memory_space<vmem>>, vector<16x128xbf16>
    tpu.vector_store %arg4[%c0_5, %c0_6], %13 {strides = array<i32>} : memref<16x128xbf16, #tpu.memory_space<vmem>>, vector<16x128xbf16>,
    return
  }
  func.func @transform_0(%arg0: i32, %arg1: i32) -> (i32, i32) {
    %c0_i32 = arith.constant 0 : i32
    return %arg0, %arg1 : i32, i32
  }
  func.func @transform_1(%arg0: i32, %arg1: i32) -> (i32, i32) {
    %c1_i32 = arith.constant 1 : i32
    %0 = arith.addi %arg1, %c1_i32 : i32
    %c0_i32 = arith.constant 0 : i32
    return %arg0, %0 : i32, i32
  }
  func.func @transform_2(%arg0: i32, %arg1: i32) -> (i32, i32) {
    %c0_i32 = arith.constant 0 : i32
    return %arg0, %arg1 : i32, i32
  }
}

</mosaic_0001>

<bundles_post_ra>
// kernel: tpu_custom_call.1
= control target key start
LH: loop header
LB: loop body
LE: loop exit
PB: predicated region body
PF: predicated region fallthrough
CT: control target
= control target key end

     0   :  { %7 = vsyncpa [#allocation3], 0  ;;  %s339_s0 = inlined_call_operand.hbm [shape: bf16[16,256], index: 0, kind: input, shape index: {}]   ;;  %s340_s1 = inlined_call_operand.hbm [shape: bf16[16,256], index: 1, kind: input, shape index: {}]   ;;  %s341_s2 = inlined_call_operand.hbm [shape: bf16[16,128], index: 2, kind: output, shape index: {}]  }
   0x1   :  { %8 = vsyncpa [#allocation6], 0 }
   0x2   :  { %9 = vsyncpa [#allocation4], 0  ;;  %s14_s11 = sshll.u32 %s339_s0, 4  ;;  %s274_s12 = smov [#allocation2]   ;;  %s15_s11 = int_to_ptr.hbm [resolvable:$true] %s14_s11 }
   0x3   :  { %s16_s13 = sshll.u32 %s274_s12, 4  ;;  %s275_s14 = smov 128   ;;  %s17_s13 = int_to_ptr.vmem [resolvable:$true] %s16_s13 }
   0x4   :  { %s276_s15 = smov 64   ;;  %s277_s16 = smov 4  }
   0x5   :  { %22 = dma.hbm_to_vmem [thread:$0]  %s15_s11, 128, %s17_s13, [#allocation3], %s275_s14, %s276_s15, %s277_s16  }
   0x6   :  { %s170_s19 = scalar_lea.hbm %s340_s1, 4  ;;  %s278_s21 = smov [#allocation5]  }
   0x7   :  { %s30_s20 = sshll.u32 %s170_s19, 4  ;;  %s32_s22 = sshll.u32 %s278_s21, 4  ;;  %s31_s20 = int_to_ptr.hbm [resolvable:$true] %s30_s20  ;;  %s33_s22 = int_to_ptr.vmem [resolvable:$true] %s32_s22 }
   0x8   :  { %38 = dma.hbm_to_vmem [thread:$0]  %s31_s20, 128, %s33_s22, [#allocation6], %s275_s14, %s276_s15, %s277_s16  }
   0x9   :  { %268 = dma.done.wait [#allocation3], 128  }
   0xa   :  { %269 = vsyncadd [#allocation3], 4294967168 }
   0xb   :  { %270 = dma.done.wait [#allocation6], 128  }
   0xc   :  { %271 = vsyncadd [#allocation6], 4294967168  ;;  %v305_v0 = vld [vmem:[#allocation2] sm:$0xff]   ;;  %v178_v60 = vld [vmem:[#allocation5] sm:$0xff]   ;;  %s279_s0 = smov [#allocation7]   ;;  %s156_s25 = sshll.u32 %s341_s2, 4  ;;  %s157_s25 = int_to_ptr.hbm [resolvable:$true] %s156_s25 }
   0xd   :  { %v175_v1 = vunpack.c.l.bf16 %v305_v0  ;;  %v176_v2 = vunpack.c.h.bf16 %v305_v0  ;;  %s154_s1 = sshll.u32 %s279_s0, 4  ;;  %s155_s1 = int_to_ptr.vmem [resolvable:$true] %s154_s1 }
   0xf   :  { %v311_v3 = vmul.f32 0.70710677, %v175_v1  ;;  %v315_v4 = vmul.f32 0.70710677, %v176_v2 }
  0x11   :  { %v62_v5 = vmul.f32 %v311_v3, %v311_v3  ;;  %v102_v6 = vmul.f32 %v315_v4, %v315_v4 }
  0x13   :  { %v63_v7 = vmin.f32 %v62_v5, 16.0  ;;  %v103_v8 = vmin.f32 %v102_v6, 16.0 }
  0x15   :  { %v64_v9 = vmul.f32 2.1237322e-06, %v63_v7  ;;  %v75_v10 = vmul.f32 3.8918573e-05, %v63_v7  ;;  %v104_v11 = vmul.f32 2.1237322e-06, %v103_v8 }
  0x16   :  { %v115_v12 = vmul.f32 3.8918573e-05, %v103_v8 }
  0x17   :  { %v65_v13 = vadd.f32 0.00028619796, %v64_v9  ;;  %v76_v14 = vadd.f32 0.001143296, %v75_v10  ;;  %v105_v15 = vadd.f32 0.00028619796, %v104_v11  ;;  %v179_v10 = vunpack.c.l.bf16 %v178_v60 }
  0x18   :  { %v116_v16 = vadd.f32 0.001143296, %v115_v12  ;;  %v56_v11 = vmul.f32 0.5, %v175_v1 }
  0x19   :  { %v66_v17 = vmul.f32 %v65_v13, %v63_v7  ;;  %v77_v18 = vmul.f32 %v76_v14, %v63_v7  ;;  %v106_v19 = vmul.f32 %v105_v15, %v103_v8  ;;  %v180_v13 = vunpack.c.h.bf16 %v178_v60 }
  0x1a   :  { %v117_v20 = vmul.f32 %v116_v16, %v103_v8  ;;  %v57_v14 = vmul.f32 0.5, %v176_v2 }
  0x1b   :  { %v67_v21 = vadd.f32 0.0036580483, %v66_v17  ;;  %v78_v22 = vadd.f32 0.014752088, %v77_v18  ;;  %v107_v23 = vadd.f32 0.0036580483, %v106_v19  ;;  %v58_v19 = vmul.f32 %v179_v10, %v56_v11 }
  0x1c   :  { %v118_v24 = vadd.f32 0.014752088, %v117_v20  ;;  %v59_v20 = vmul.f32 %v180_v13, %v57_v14 }
  0x1d   :  { %v68_v25 = vmul.f32 %v67_v21, %v63_v7  ;;  %v79_v26 = vmul.f32 %v78_v22, %v63_v7  ;;  %v108_v27 = vmul.f32 %v107_v23, %v103_v8 }
  0x1e   :  { %v119_v28 = vmul.f32 %v118_v24, %v103_v8 }
  0x1f   :  { %v80_v29 = vadd.f32 0.112945676, %v79_v26  ;;  %v69_v30 = vadd.f32 0.05243302, %v68_v25  ;;  %v109_v33 = vadd.f32 0.05243302, %v108_v27 }
  0x20   :  { %v120_v31 = vadd.f32 0.112945676, %v119_v28 }
  0x21   :  { %v81_v32 = vmul.f32 %v80_v29, %v63_v7  ;;  %v70_v36 = vmul.f32 %v69_v30, %v63_v7  ;;  %v110_v39 = vmul.f32 %v109_v33, %v103_v8 }
  0x22   :  { %v121_v34 = vmul.f32 %v120_v31, %v103_v8 }
  0x23   :  { %v82_v35 = vadd.f32 0.4994258, %v81_v32  ;;  %v71_v42 = vadd.f32 0.18741608, %v70_v36  ;;  %v111_v44 = vadd.f32 0.18741608, %v110_v39 }
  0x24   :  { %v122_v37 = vadd.f32 0.4994258, %v121_v34 }
  0x25   :  { %v83_v38 = vmul.f32 %v82_v35, %v63_v7  ;;  %v72_v45 = vmul.f32 %v71_v42, %v63_v7  ;;  %v112_v46 = vmul.f32 %v111_v44, %v103_v8 }
  0x26   :  { %v123_v40 = vmul.f32 %v122_v37, %v103_v8 }
  0x27   :  { %v84_v41 = vadd.f32 1.0, %v83_v38  ;;  %v73_v49 = vadd.f32 1.1283791, %v72_v45  ;;  %v113_v52 = vadd.f32 1.1283791, %v112_v46 }
  0x28   :  { %v124_v43 = vadd.f32 1.0, %v123_v40 }
  0x29   :  { %192 = vrcp.f32 %v84_v41  ;;  %vm90_vm0 = vweird.f32 %v84_v41  ;;  %v96_v51 = vand.u32 2147483648, %v84_v41  ;;  %v94_v55 = vand.u32 2147483647, %v84_v41 }
  0x2a   :  { %194 = vrcp.f32 %v124_v43  ;;  %v136_v56 = vand.u32 2147483648, %v124_v43  ;;  %vm130_vm2 = vweird.f32 %v124_v43  ;;  %v134_v58 = vand.u32 2147483647, %v124_v43 }
  0x2b   :  { %v97_v62 = vor.u32 1.1754944e-38, %v96_v51  ;;  %v74_v5 = vmul.f32 %v73_v49, %v311_v3  ;;  %vm95_vm5 = vcmp.eq.f32.partialorder %v94_v55, 8.507059e+37  ;;  %v114_v8 = vmul.f32 %v113_v52, %v315_v4 }
  0x2c   :  { %v137_v7 = vor.u32 1.1754944e-38, %v136_v56  ;;  %vm135_vm7 = vcmp.eq.f32.partialorder %v134_v58, 8.507059e+37 }
  0x2f   :  { %v193_v47 = vpop.eup %192 }
  0x30   :  { %v195_v48 = vpop.eup %194  ;;  %v86_v50 = vmul.f32 %v193_v47, %v84_v41  ;;  %vm91_vm1 = vweird.f32 %v193_v47 }
  0x31   :  { %v126_v53 = vmul.f32 %v195_v48, %v124_v43  ;;  %vm131_vm3 = vweird.f32 %v195_v48  ;;  %vm321_vm4 = vmor %vm90_vm0, %vm91_vm1 }
  0x32   :  { %v87_v54 = vsub.f32 1.0, %v86_v50  ;;  %vm132_vm6 = vmor %vm130_vm2, %vm131_vm3 }
  0x33   :  { %v127_v57 = vsub.f32 1.0, %v126_v53 }
  0x34   :  { %v88_v59 = vmul.f32 %v193_v47, %v87_v54 }
  0x35   :  { %v128_v63 = vmul.f32 %v195_v48, %v127_v57 }
  0x36   :  { %v89_v6 = vadd.f32 %v193_v47, %v88_v59 }
  0x37   :  { %v129_v9 = vadd.f32 %v195_v48, %v128_v63 }
  0x38   :  { %v93_v12 = vsel %vm321_vm4, %v193_v47, %v89_v6 }
  0x39   :  { %v98_v3 = vsel %vm95_vm5, %v97_v62, %v93_v12  ;;  %v133_v15 = vsel %vm132_vm6, %v195_v48, %v129_v9 }
  0x3a   :  { %v99_v16 = vmul.f32 %v98_v3, %v74_v5  ;;  %v138_v17 = vsel %vm135_vm7, %v137_v7, %v133_v15 }
  0x3b   :  { %v139_v18 = vmul.f32 %v138_v17, %v114_v8 }
  0x3c   :  { %v171_v4 = vclamps-f32 %v99_v16, 1.0 }
  0x3d   :  { %v172_v21 = vclamps-f32 %v139_v18, 1.0 }
  0x3e   :  { %v142_v22 = vadd.f32 1.0, %v171_v4 }
  0x3f   :  { %v143_v23 = vadd.f32 1.0, %v172_v21 }
  0x40   :  { %v144_v24 = vmul.f32 %v142_v22, %v58_v19 }
  0x41   :  { %v145_v0 = vmul.f32 %v143_v23, %v59_v20 }
  0x43   :  { %v184_v1 = vpack.c.bf16 %v145_v0, %v144_v24 }
  0x45   :  { %185 = vst [vmem:[#allocation7] sm:$0xff] %v184_v1  }
  0x46   :  { %162 = dma.vmem_to_hbm [thread:$0]  %s155_s1, 128, %s157_s25, [#allocation4], %s276_s15, %s276_s15, %s277_s16  }
  0x47   :  { %272 = dma.done.wait [#allocation4], 128  }
  0x48   :  { %273 = vsyncadd [#allocation4], 4294967168 }
  0x49   :  { %167 = vsyncpa [#allocation3], 1 }
  0x4a   :  { %168 = vsyncpa [#allocation6], 1 }
  0x4b   :  { %169 = vsyncpa [#allocation4], 1 }

</bundles_post_ra>
